<compile_context>
chip_gen: v5e
topology: v5e:2x2
jax: 0.10.0
libtpu: 0.0.40
codegen_flags: <defaults>
</compile_context>

<pallas_src>
import functools

import jax
import jax.numpy as jnp
from jax.experimental import pallas as pl
from jax.experimental.pallas import tpu as pltpu


def _cls_head_kernel(x_ref, gamma_ref, beta_ref, w_ref, b_ref, o_ref, acc_ref,
                     *, n_total: int, eps: float):
    # x_ref:     (TB, TN, E)  token tile, native dtype (streamed over the grid)
    # gamma_ref: (1, E)       LayerNorm scale   (VMEM resident)
    # beta_ref:  (1, E)       LayerNorm shift   (VMEM resident)
    # w_ref:     (E, Cp)      linear weight, lane-padded (VMEM resident)
    # b_ref:     (1, Cp)      linear bias, lane-padded   (VMEM resident)
    # o_ref:     (TB, Cp)     logits, written once in the epilogue
    # acc_ref:   (TB, SUB, E) f32 partial sums (SUB=8 if TN%8==0 else 1)
    k = pl.program_id(1)
    tb, tn, e = x_ref.shape
    sub = acc_ref.shape[1]

    @pl.when(k == 0)
    def _():
        acc_ref[...] = jnp.zeros_like(acc_ref)

    def _accumulate(x):
        if sub == 8:
            # Reduce the seq tile down to 8 sublane rows with pure vreg adds
            # (no per-step cross-sublane XLU reduce). The reshape splits the
            # sublane axis exactly along the native (8,128) tiling -> free.
            acc_ref[...] += jnp.sum(x.reshape(tb, tn // 8, 8, e), axis=1,
                                    dtype=jnp.float32)
        else:
            acc_ref[...] += jnp.sum(x, axis=1, keepdims=True, dtype=jnp.float32)

    if n_total % tn == 0:
        # Every seq tile is full: nothing but the sum in the hot loop.
        _accumulate(x_ref[...])
    else:
        full = (k + 1) * tn <= n_total

        @pl.when(full)
        def _():
            _accumulate(x_ref[...])

        @pl.when(jnp.logical_not(full))
        def _():
            # Ragged last seq tile: zero rows >= n_total before summing so
            # out-of-bounds garbage never reaches the accumulator.
            n_valid = n_total - k * tn
            seq_pos = jax.lax.broadcasted_iota(jnp.int32, (1, tn, e), 1)
            _accumulate(jnp.where(seq_pos < n_valid, x_ref[...], 0))

    @pl.when(k == pl.num_programs(1) - 1)
    def _():
        # Epilogue (once per batch tile): mean -> LayerNorm -> Linear.
        pooled = jnp.sum(acc_ref[...], axis=1) * (1.0 / n_total)       # (TB, E)
        mu = jnp.mean(pooled, axis=-1, keepdims=True)
        var = jnp.mean(jnp.square(pooled - mu), axis=-1, keepdims=True)
        normed = (pooled - mu) * jax.lax.rsqrt(var + eps)
        normed = (normed * gamma_ref[...].astype(jnp.float32)
                  + beta_ref[...].astype(jnp.float32))
        # Feed the MXU in the weights' dtype (native bf16 path when weights
        # are bf16); accumulation stays f32. No f32 upcast/copy of W.
        out = jnp.dot(normed.astype(w_ref.dtype), w_ref[...],
                      preferred_element_type=jnp.float32)              # (TB, Cp)
        out = out + b_ref[...].astype(jnp.float32)
        o_ref[...] = out.astype(o_ref.dtype)


def classification_head_with_avg_pooling(x, gamma, beta, w, b, *,
                                         tb=None, tn=None, eps=1e-5,
                                         x_tile_target_bytes=8 * 1024 * 1024,
                                         vmem_limit_bytes=48 * 1024 * 1024):
    """x: (B, N, E); gamma/beta: (E,) or (1,E); w: (E, C); b: (C,) -> (B, C)."""
    B, N, E = x.shape
    C = w.shape[1]
    gamma = gamma.reshape(1, E)
    beta = beta.reshape(1, E)
    b = b.reshape(1, C)

    # ---- batch tile -------------------------------------------------------
    if tb is None:
        if B <= 8:
            tb = B                                    # block == full dim is legal
        else:
            # Fill the MXU M dim in the epilogue and amortize it ...
            tb = min(128, (B // 8) * 8)
            # ... but keep >= 2 batch tiles so the "parallel" axis can be
            # sharded across both v7x TensorCores.
            if pl.cdiv(B, tb) < 2:
                tb = max(8, ((pl.cdiv(B, 2) + 7) // 8) * 8)
    n_batch_tiles = pl.cdiv(B, tb)

    # ---- seq tile ---------------------------------------------------------
    if tn is None:
        if N <= 8:
            tn = N                                    # full seq dim for tiny inputs
        else:
            # ~8 MiB per x tile (pipeline double-buffers it): per-grid-step
            # overhead <10% of DMA time even at v7x's 3.2 TB/s, and well under
            # the 48 MiB VMEM budget (2x tile + W + acc + params + output).
            per_row = tb * E * x.dtype.itemsize
            tn = max(8, min(N, x_tile_target_bytes // max(1, per_row)))
            tn = max(8, (tn // 8) * 8)                # sublane aligned
    n_seq_tiles = pl.cdiv(N, tn)

    # Lane-dense output: pad n_classes to a multiple of 128 (tiny), slice
    # the padding off afterwards, so the store is an unmasked vst.
    C_pad = pl.cdiv(C, 128) * 128
    if C_pad != C:
        w = jnp.pad(w, ((0, 0), (0, C_pad - C)))
        b = jnp.pad(b, ((0, 0), (0, C_pad - C)))

    # NOTE: x is NOT padded -> it is streamed from HBM exactly once.
    sub = 8 if tn % 8 == 0 else 1
    grid = (n_batch_tiles, n_seq_tiles)

    itemsize = x.dtype.itemsize
    cost = pl.CostEstimate(
        flops=B * N * E + 2 * B * E * C_pad + 8 * B * E,
        transcendentals=B,
        bytes_accessed=(B * N * E * itemsize                       # stream x once
                        + B * C_pad * itemsize                     # write logits
                        + (E * C_pad + C_pad) * w.dtype.itemsize   # W + bias
                        + 2 * E * gamma.dtype.itemsize),           # gamma + beta
    )

    out = pl.pallas_call(
        functools.partial(_cls_head_kernel, n_total=N, eps=eps),
        out_shape=jax.ShapeDtypeStruct((B, C_pad), x.dtype),
        grid_spec=pltpu.PrefetchScalarGridSpec(
            num_scalar_prefetch=0,
            grid=grid,
            in_specs=[
                pl.BlockSpec((tb, tn, E), lambda i, k: (i, k, 0)),   # streamed x
                pl.BlockSpec((1, E), lambda i, k: (0, 0)),           # gamma (resident)
                pl.BlockSpec((1, E), lambda i, k: (0, 0)),           # beta  (resident)
                pl.BlockSpec((E, C_pad), lambda i, k: (0, 0)),       # W     (resident)
                pl.BlockSpec((1, C_pad), lambda i, k: (0, 0)),       # bias  (resident)
            ],
            out_specs=pl.BlockSpec((tb, C_pad), lambda i, k: (i, 0)),
            scratch_shapes=[pltpu.VMEM((tb, sub, E), jnp.float32)],
        ),
        compiler_params=pltpu.CompilerParams(
            dimension_semantics=("parallel", "arbitrary"),
            vmem_limit_bytes=vmem_limit_bytes,
        ),
        cost_estimate=cost,
    )(x, gamma, beta, w, b)

    return out[:, :C] if C_pad != C else out


def _reference(x, gamma, beta, w, b, eps=1e-5):
    pooled = jnp.mean(x.astype(jnp.float32), axis=1)
    mu = jnp.mean(pooled, axis=-1, keepdims=True)
    var = jnp.mean(jnp.square(pooled - mu), axis=-1, keepdims=True)
    normed = (pooled - mu) * jax.lax.rsqrt(var + eps)
    normed = normed * gamma.reshape(1, -1) + beta.reshape(1, -1)
    return normed @ w + b.reshape(1, -1)


def _run_case(key, B, N, E, C):
    kx, kw, kb = jax.random.split(key, 3)
    x = jax.random.normal(kx, (B, N, E), dtype=jnp.float32)
    # Mirrors nn.LayerNorm(E) and nn.Linear(E, C) init (weight passed as W^T).
    gamma = jnp.ones((E,), dtype=jnp.float32)
    beta = jnp.zeros((E,), dtype=jnp.float32)
    bound = 1.0 / (E ** 0.5)
    w = jax.random.uniform(kw, (E, C), minval=-bound, maxval=bound,
                           dtype=jnp.float32)
    bias = jax.random.uniform(kb, (C,), minval=-bound, maxval=bound,
                              dtype=jnp.float32)

    out = classification_head_with_avg_pooling(x, gamma, beta, w, bias)
    out = jax.block_until_ready(out)

    ref = _reference(x, gamma, beta, w, bias)
    assert out.shape == (B, C)
    assert jnp.allclose(out, ref, atol=1e-5, rtol=1e-5), \
        f"mismatch vs reference for shape {(B, N, E, C)}"


if __name__ == "__main__":
    key = jax.random.PRNGKey(0)
    k1, k2 = jax.random.split(key)

    # Case 1: N=20 -> ragged (masked) final seq tile; single batch tile.
    _run_case(k1, B=2, N=20, E=32, C=10)
    # Case 2: B=16 -> >= 2 batch tiles ("parallel" axis); evenly divided seq.
    _run_case(k2, B=16, N=24, E=64, C=3)

    print("KERNEL_OK")
</pallas_src>

<mosaic_0001>
module attributes {stable_mosaic.version = 11 : i64} {
  func.func @_cls_head_kernel(%arg0: i32, %arg1: i32, %arg2: memref<2x16x32xf32, #tpu.memory_space<vmem>>, %arg3: memref<1x32xf32, #tpu.memory_space<vmem>>, %arg4: memref<1x32xf32, #tpu.memory_space<vmem>>, %arg5: memref<32x128xf32, #tpu.memory_space<vmem>>, %arg6: memref<1x128xf32, #tpu.memory_space<vmem>>, %arg7: memref<2x128xf32, #tpu.memory_space<vmem>>, %arg8: memref<2x8x32xf32, #tpu.memory_space<vmem>>) attributes {dimension_semantics = [#tpu.dimension_semantics<parallel>, #tpu.dimension_semantics<arbitrary>], iteration_bounds = array<i64: 1, 2>, scalar_prefetch = 0 : i64, scratch_operands = 1 : i64, tpu.core_type = #tpu.core_type<tc>, window_params = [{transform_indices = @transform_0, window_bounds = array<i64: 2, 16, 32>}, {pipeline_mode = #tpu.pipeline_mode<synchronous>, transform_indices = @transform_1, window_bounds = array<i64: 1, 32>}, {pipeline_mode = #tpu.pipeline_mode<synchronous>, transform_indices = @transform_2, window_bounds = array<i64: 1, 32>}, {pipeline_mode = #tpu.pipeline_mode<synchronous>, transform_indices = @transform_3, window_bounds = array<i64: 32, 128>}, {pipeline_mode = #tpu.pipeline_mode<synchronous>, transform_indices = @transform_4, window_bounds = array<i64: 1, 128>}, {transform_indices = @transform_5, window_bounds = array<i64: 2, 128>}]} {
    %c0_i32 = arith.constant 0 : i32
    %0 = arith.cmpi eq, %arg1, %c0_i32 : i32
    %1 = arith.extui %0 : i1 to i32
    %c0_i32_0 = arith.constant 0 : i32
    %2 = arith.cmpi ne, %1, %c0_i32_0 : i32
    scf.if %2 {
      %cst = arith.constant 0.000000e+00 : f32
      %14 = vector.broadcast %cst : f32 to vector<2x8x32xf32>
      %c0 = arith.constant 0 : index
      %c0_5 = arith.constant 0 : index
      %c0_6 = arith.constant 0 : index
      %15 = vector.load %arg8[%c0, %c0_5, %c0_6] : memref<2x8x32xf32, #tpu.memory_space<vmem>>, vector<2x8x32xf32>
      tpu.vector_store %arg8[%c0, %c0_5, %c0_6], %14 {strides = array<i32>} : memref<2x8x32xf32, #tpu.memory_space<vmem>>, vector<2x8x32xf32>,
    } else {
    }
    %c1_i32 = arith.constant 1 : i32
    %3 = arith.addi %arg1, %c1_i32 : i32
    %c16_i32 = arith.constant 16 : i32
    %4 = arith.muli %3, %c16_i32 : i32
    %c20_i32 = arith.constant 20 : i32
    %5 = arith.cmpi sle, %4, %c20_i32 : i32
    %6 = arith.extui %5 : i1 to i32
    %c0_i32_1 = arith.constant 0 : i32
    %7 = arith.cmpi ne, %6, %c0_i32_1 : i32
    scf.if %7 {
      %c0 = arith.constant 0 : index
      %c0_5 = arith.constant 0 : index
      %c0_6 = arith.constant 0 : index
      %14 = vector.load %arg2[%c0, %c0_5, %c0_6] : memref<2x16x32xf32, #tpu.memory_space<vmem>>, vector<2x16x32xf32>
      %c0_7 = arith.constant 0 : index
      %c0_8 = arith.constant 0 : index
      %c0_9 = arith.constant 0 : index
      %15 = vector.load %arg8[%c0_7, %c0_8, %c0_9] : memref<2x8x32xf32, #tpu.memory_space<vmem>>, vector<2x8x32xf32>
      %16 = vector.shape_cast %14 : vector<2x16x32xf32> to vector<2x2x8x32xf32>
      %cst = arith.constant dense<0.000000e+00> : vector<2x8x32xf32>
      %17 = vector.multi_reduction <add>, %16, %cst [1] : vector<2x2x8x32xf32> to vector<2x8x32xf32>
      %18 = arith.addf %15, %17 : vector<2x8x32xf32>
      %c0_10 = arith.constant 0 : index
      %c0_11 = arith.constant 0 : index
      %c0_12 = arith.constant 0 : index
      %19 = vector.load %arg8[%c0_10, %c0_11, %c0_12] : memref<2x8x32xf32, #tpu.memory_space<vmem>>, vector<2x8x32xf32>
      tpu.vector_store %arg8[%c0_10, %c0_11, %c0_12], %18 {strides = array<i32>} : memref<2x8x32xf32, #tpu.memory_space<vmem>>, vector<2x8x32xf32>,
    } else {
    }
    %true = arith.constant true
    %8 = arith.xori %5, %true : i1
    %9 = arith.extui %8 : i1 to i32
    %c0_i32_2 = arith.constant 0 : i32
    %10 = arith.cmpi ne, %9, %c0_i32_2 : i32
    scf.if %10 {
      %c16_i32_5 = arith.constant 16 : i32
      %14 = arith.muli %arg1, %c16_i32_5 : i32
      %c20_i32_6 = arith.constant 20 : i32
      %15 = arith.subi %c20_i32_6, %14 : i32
      %16 = tpu.iota {dimensions = array<i32: 1>} : vector<1x16x32xi32>
      %17 = vector.broadcast %15 : i32 to vector<1x16x32xi32>
      %18 = arith.cmpi slt, %16, %17 : vector<1x16x32xi32>
      %c0 = arith.constant 0 : index
      %c0_7 = arith.constant 0 : index
      %c0_8 = arith.constant 0 : index
      %19 = vector.load %arg2[%c0, %c0_7, %c0_8] : memref<2x16x32xf32, #tpu.memory_space<vmem>>, vector<2x16x32xf32>
      %c0_i32_9 = arith.constant 0 : i32
      %20 = arith.sitofp %c0_i32_9 : i32 to f32
      %21 = vector.shape_cast %18 : vector<1x16x32xi1> to vector<1x16x32xi1>
      %22 = vector.broadcast %21 : vector<1x16x32xi1> to vector<2x16x32xi1>
      %23 = vector.broadcast %20 : f32 to vector<2x16x32xf32>
      %24 = arith.select %22, %19, %23 : vector<2x16x32xi1>, vector<2x16x32xf32>
      %c0_10 = arith.constant 0 : index
      %c0_11 = arith.constant 0 : index
      %c0_12 = arith.constant 0 : index
      %25 = vector.load %arg8[%c0_10, %c0_11, %c0_12] : memref<2x8x32xf32, #tpu.memory_space<vmem>>, vector<2x8x32xf32>
      %26 = vector.shape_cast %24 : vector<2x16x32xf32> to vector<2x2x8x32xf32>
      %cst = arith.constant dense<0.000000e+00> : vector<2x8x32xf32>
      %27 = vector.multi_reduction <add>, %26, %cst [1] : vector<2x2x8x32xf32> to vector<2x8x32xf32>
      %28 = arith.addf %25, %27 : vector<2x8x32xf32>
      %c0_13 = arith.constant 0 : index
      %c0_14 = arith.constant 0 : index
      %c0_15 = arith.constant 0 : index
      %29 = vector.load %arg8[%c0_13, %c0_14, %c0_15] : memref<2x8x32xf32, #tpu.memory_space<vmem>>, vector<2x8x32xf32>
      tpu.vector_store %arg8[%c0_13, %c0_14, %c0_15], %28 {strides = array<i32>} : memref<2x8x32xf32, #tpu.memory_space<vmem>>, vector<2x8x32xf32>,
    } else {
    }
    %c1_i32_3 = arith.constant 1 : i32
    %11 = arith.cmpi eq, %arg1, %c1_i32_3 : i32
    %12 = arith.extui %11 : i1 to i32
    %c0_i32_4 = arith.constant 0 : i32
    %13 = arith.cmpi ne, %12, %c0_i32_4 : i32
    scf.if %13 {
      %c0 = arith.constant 0 : index
      %c0_5 = arith.constant 0 : index
      %c0_6 = arith.constant 0 : index
      %14 = vector.load %arg8[%c0, %c0_5, %c0_6] : memref<2x8x32xf32, #tpu.memory_space<vmem>>, vector<2x8x32xf32>
      %cst = arith.constant dense<0.000000e+00> : vector<2x32xf32>
      %15 = vector.multi_reduction <add>, %14, %cst [1] : vector<2x8x32xf32> to vector<2x32xf32>
      %cst_7 = arith.constant 5.000000e-02 : f32
      %16 = vector.broadcast %cst_7 : f32 to vector<2x32xf32>
      %17 = arith.mulf %15, %16 : vector<2x32xf32>
      %cst_8 = arith.constant dense<0.000000e+00> : vector<2xf32>
      %18 = vector.multi_reduction <add>, %17, %cst_8 [1] : vector<2x32xf32> to vector<2xf32>
      %19 = vector.shape_cast %18 : vector<2xf32> to vector<2x1xf32>
      %cst_9 = arith.constant 3.200000e+01 : f32
      %20 = vector.broadcast %cst_9 : f32 to vector<2x1xf32>
      %21 = arith.divf %19, %20 : vector<2x1xf32>
      %22 = vector.broadcast %21 : vector<2x1xf32> to vector<2x32xf32>
      %23 = arith.subf %17, %22 : vector<2x32xf32>
      %24 = arith.mulf %23, %23 : vector<2x32xf32>
      %cst_10 = arith.constant dense<0.000000e+00> : vector<2xf32>
      %25 = vector.multi_reduction <add>, %24, %cst_10 [1] : vector<2x32xf32> to vector<2xf32>
      %26 = vector.shape_cast %25 : vector<2xf32> to vector<2x1xf32>
      %cst_11 = arith.constant 3.200000e+01 : f32
      %27 = vector.broadcast %cst_11 : f32 to vector<2x1xf32>
      %28 = arith.divf %26, %27 : vector<2x1xf32>
      %29 = vector.broadcast %21 : vector<2x1xf32> to vector<2x32xf32>
      %30 = arith.subf %17, %29 : vector<2x32xf32>
      %cst_12 = arith.constant 9.99999974E-6 : f32
      %31 = vector.broadcast %cst_12 : f32 to vector<2x1xf32>
      %32 = arith.addf %28, %31 : vector<2x1xf32>
      %33 = math.rsqrt %32 : vector<2x1xf32>
      %34 = vector.broadcast %33 : vector<2x1xf32> to vector<2x32xf32>
      %35 = arith.mulf %30, %34 : vector<2x32xf32>
      %c0_13 = arith.constant 0 : index
      %c0_14 = arith.constant 0 : index
      %36 = vector.load %arg3[%c0_13, %c0_14] : memref<1x32xf32, #tpu.memory_space<vmem>>, vector<1x32xf32>
      %37 = vector.broadcast %36 : vector<1x32xf32> to vector<2x32xf32>
      %38 = arith.mulf %35, %37 : vector<2x32xf32>
      %c0_15 = arith.constant 0 : index
      %c0_16 = arith.constant 0 : index
      %39 = vector.load %arg4[%c0_15, %c0_16] : memref<1x32xf32, #tpu.memory_space<vmem>>, vector<1x32xf32>
      %40 = vector.broadcast %39 : vector<1x32xf32> to vector<2x32xf32>
      %41 = arith.addf %38, %40 : vector<2x32xf32>
      %c0_17 = arith.constant 0 : index
      %c0_18 = arith.constant 0 : index
      %42 = vector.load %arg5[%c0_17, %c0_18] : memref<32x128xf32, #tpu.memory_space<vmem>>, vector<32x128xf32>
      %cst_19 = arith.constant dense<0.000000e+00> : vector<2x128xf32>
      %43 = tpu.matmul %41, %42, %cst_19 {dimension_numbers = #tpu.dot_dimension_numbers<[1], [0], [0], [1], [0, 0, 1, 1], [], []>} : vector<2x32xf32>, vector<32x128xf32>, vector<2x128xf32> -> vector<2x128xf32>
      %c0_20 = arith.constant 0 : index
      %c0_21 = arith.constant 0 : index
      %44 = vector.load %arg6[%c0_20, %c0_21] : memref<1x128xf32, #tpu.memory_space<vmem>>, vector<1x128xf32>
      %45 = vector.broadcast %44 : vector<1x128xf32> to vector<2x128xf32>
      %46 = arith.addf %43, %45 : vector<2x128xf32>
      %c0_22 = arith.constant 0 : index
      %c0_23 = arith.constant 0 : index
      %47 = vector.load %arg7[%c0_22, %c0_23] : memref<2x128xf32, #tpu.memory_space<vmem>>, vector<2x128xf32>
      tpu.vector_store %arg7[%c0_22, %c0_23], %46 {strides = array<i32>} : memref<2x128xf32, #tpu.memory_space<vmem>>, vector<2x128xf32>,
    } else {
    }
    return
  }
  func.func @transform_0(%arg0: i32, %arg1: i32) -> (i32, i32, i32) {
    %c0_i32 = arith.constant 0 : i32
    %c0_i32_0 = arith.constant 0 : i32
    return %arg0, %arg1, %c0_i32 : i32, i32, i32
  }
  func.func @transform_1(%arg0: i32, %arg1: i32) -> (i32, i32) {
    %c0_i32 = arith.constant 0 : i32
    %c0_i32_0 = arith.constant 0 : i32
    %c0_i32_1 = arith.constant 0 : i32
    return %c0_i32, %c0_i32_0 : i32, i32
  }
  func.func @transform_2(%arg0: i32, %arg1: i32) -> (i32, i32) {
    %c0_i32 = arith.constant 0 : i32
    %c0_i32_0 = arith.constant 0 : i32
    %c0_i32_1 = arith.constant 0 : i32
    return %c0_i32, %c0_i32_0 : i32, i32
  }
  func.func @transform_3(%arg0: i32, %arg1: i32) -> (i32, i32) {
    %c0_i32 = arith.constant 0 : i32
    %c0_i32_0 = arith.constant 0 : i32
    %c0_i32_1 = arith.constant 0 : i32
    return %c0_i32, %c0_i32_0 : i32, i32
  }
  func.func @transform_4(%arg0: i32, %arg1: i32) -> (i32, i32) {
    %c0_i32 = arith.constant 0 : i32
    %c0_i32_0 = arith.constant 0 : i32
    %c0_i32_1 = arith.constant 0 : i32
    return %c0_i32, %c0_i32_0 : i32, i32
  }
  func.func @transform_5(%arg0: i32, %arg1: i32) -> (i32, i32) {
    %c0_i32 = arith.constant 0 : i32
    %c0_i32_0 = arith.constant 0 : i32
    return %arg0, %c0_i32 : i32, i32
  }
}

</mosaic_0001>

<bundles_post_ra>
// kernel: tpu_custom_call.1
= control target key start
LH: loop header
LB: loop body
LE: loop exit
PB: predicated region body
PF: predicated region fallthrough
CT: control target
= control target key end

     0   :  { %10 = vsyncpa [#allocation5], 0  ;;  %s996_s18 = smov 0   ;;  %s998_s19 = smov 0   ;;  %s1157_s0 = inlined_call_operand.vmem [shape: f32[2,20,32], index: 0, kind: input, shape index: {}]   ;;  %s1158_s1 = inlined_call_operand.vmem [shape: f32[1,32], index: 1, kind: input, shape index: {}]   ;;  %s1159_s2 = inlined_call_operand.vmem [shape: f32[1,32], index: 2, kind: input, shape index: {}]   ;;  %s1160_s3 = inlined_call_operand.vmem [shape: f32[32,128], index: 3, kind: input, shape index: {}]   ;;  %s1161_s4 = inlined_call_operand.vmem [shape: f32[1,128], index: 4, kind: input, shape index: {}]   ;;  %s1162_s5 = inlined_call_operand.hbm [shape: f32[2,128], index: 5, kind: output, shape index: {}]  }
   0x1   :  { %s1000_s20 = smov 0   ;;  %s1002_s21 = smov 0  }
   0x2   :  { %s1004_s22 = smov 0  }
   0x3 LB: > { %s671_s23 = sadd.s32 4294967295, %s929_s22   ;;  %s25_s24 = sadd.s32 1, %s925_s21  ;;  %s929_s22 = sphi %s1004_s22, %s16_s22   ;;  %s925_s21 = sphi %s1002_s21, %s1169_s21   ;;  %s921_s20 = sphi %s1000_s20, %s1168_s20   ;;  %s917_s19 = sphi %s998_s19, %s1167_s19   ;;  %s913_s18 = sphi %s996_s18, %s1166_s18  }
   0x4   : > { %p26_p0 = scmp.ge.s32.totalorder %s25_s24, 2  ;;  %p44_p1 = scmp.ne.s32.totalorder %s917_s19, %s913_s18 }
   0x5   : > { %p45_p2 = scmp.eq.s32.totalorder %s929_s22, 0  ;;  %s37_s26 = sadd.s32 1, %s917_s19 }
   0x6   : > { %s1171_s24 = smov (%p26_p0, %s25_s24), 0  ;;  %p673_p5 = scmp.ge.s32.totalorder %s929_s22, 2 }
   0x7   : > { %p46_p3 = por %p45_p2, %p44_p1  ;;  %s33_s25 = ssub.s32 %s925_s21, %s1171_s24 }
   0x8   : > { %p35_p4 = scmp.eq.s32.totalorder %s33_s25, 0  ;;  %192 = sbr.rel (%p673_p5) target bundleno = 57 (0x39), region = 32 }
   0xa   : > { %s1032_s27 = scalar_select %p35_p4, %s917_s19, %s37_s26  }
   0xd   : > { %195 = sbr.rel (!%p46_p3) target bundleno = 57 (0x39), region = 36  ;;  %s197_s28 = sand.u32 (%p46_p3), 1, %s917_s19  }
   0xe   : > { %s675_s29 = sshll.u32 (%p46_p3), %s925_s21, 1  ;;  %s674_s30 = sshll.u32 (%p46_p3), %s197_s28, 5 }
   0xf   : > { %s202_s6 = ssub.s32 (%p46_p3), 3, %s675_s29  ;;  %s702_s7 = sshll.u32 (%p46_p3), %s925_s21, 4 }
  0x10   : > { %p203_p6 = scmp.lt.s32.totalorder (%p46_p3), %s202_s6, 2  ;;  %s1043_s10 = scalar_lea.vmem (%p46_p3), %s1157_s0, %s702_s7  }
  0x11   : > { %s1046_s12 = scalar_lea.vmem (%p46_p3), [#allocation3], %s674_s30  }
  0x12   : > { %s1173_s6 = smov (!%p203_p6, %s202_s6), 2 }
  0x13   : > { %s676_s11 = sshll.u32 %s1173_s6, 4 }
  0x14   : > { %p679_p7 = scmp.eq.s32.totalorder %s676_s11, 0 }
  0x15   : > { %s1049_s13 = sshrl.u32 (!%p679_p7), %s1173_s6, 1 }
  0x16   : > { %213 = sbr.rel (%p679_p7) target bundleno = 57 (0x39), region = 40  ;;  %p680_p8 = scmp.le.s32.totalorder (!%p679_p7), %s1049_s13, 0 }
  0x1b   : > { %622 = sbr.rel (%p680_p8) target bundleno = 40 (0x28), region = 143  ;;  %s1163_s14 = smov (!%p680_p8), %s1046_s12 }
  0x1c   : > { %s1164_s15 = smov (!%p680_p8), %s1043_s10  ;;  %s1058_s16 = smov (!%p680_p8), 0  }
  0x1d   : > { %s943_s17 = smov (!%p680_p8), 0  }
  0x20 LB: >> { %v284_v0 = vld [vmem:[%s937_s15] sm:$0xff]  ;;  %v286_v1 = vld [vmem:[%s937_s15 + $0x8] sm:$0xff]  ;;  %v288_v2 = vld [vmem:[%s937_s15 + $0x18] sm:$0xff]  ;;  %s292_s25 = sadd.s32 1, %s941_s16  ;;  %s278_s17 = sadd.s32 1, %s945_s17   ;;  %s945_s17 = sphi %s943_s17, %s278_s17   ;;  %s941_s16 = sphi %s1058_s16, %s1165_s16   ;;  %s937_s15 = sphi %s1164_s15, %s297_s15   ;;  %s933_s14 = sphi %s1163_s14, %s298_s14  }
  0x21   : >> { %285 = vst [vmem:[%s933_s14] sm:$0xff] %v284_v0  ;;  %v290_v3 = vld [vmem:[%s937_s15 + $0x20] sm:$0xff]  ;;  %p293_p9 = scmp.ge.s32.totalorder %s292_s25, %s1049_s13  ;;  %p277_p10 = scmp.ge.s32.totalorder %s278_s17, %s1049_s13 }
  0x22   : >> { %287 = vst [vmem:[%s933_s14 + $0x8] sm:$0xff] %v286_v1 }
  0x23   : >> { %289 = vst [vmem:[%s933_s14 + $0x10] sm:$0xff] %v288_v2  ;;  %s1175_s25 = smov (%p293_p9, %s292_s25), 0  ;;  %280 = sbr.rel (!%p277_p10) target bundleno = 32 (0x20), region = 149 }
  0x24   : >> { %291 = vst [vmem:[%s933_s14 + $0x18] sm:$0xff] %v290_v3  ;;  %s681_s26 = sshll.u32 %s1175_s25, 4  ;;  %s1165_s16 = smov %s1175_s25 }
  0x25   : >> { %s297_s15 = scalar_lea.vmem %s1043_s10, %s681_s26   ;;  %s298_s14 = scalar_lea.vmem %s1046_s12, %s681_s26 [#allocation3]  }
  0x28 PF: > { %s1074_s28 = sand.u32 1, %s1173_s6   ;;  %s703_s29 = sshll.u32 %s1049_s13, 4 }
  0x29   : > { %s1078_s30 = scalar_lea.vmem %s1043_s10, %s703_s29   ;;  %s305_s7 = scalar_lea.vmem %s1046_s12, %s703_s29 [#allocation3]  }
  0x2a   : > { %p686_p11 = scmp.le.s32.totalorder %s1074_s28, 0 }
  0x2b   : > { %s947_s8 = smov (!%p686_p11), %s305_s7   ;;  %s951_s9 = smov (!%p686_p11), %s1078_s30  }
  0x2c   : > { %636 = sbr.rel (%p686_p11) target bundleno = 57 (0x39), region = 154  ;;  %s955_s11 = smov (!%p686_p11), 0  }
  0x2d   : > { %s959_s16 = smov (!%p686_p11), 0  }
  0x31 LB: >> { %v315_v4 = vld [vmem:[%s953_s9] sm:$0xff]  ;;  %v317_v5 = vld [vmem:[%s953_s9 + $0x18] sm:$0xff]  ;;  %s319_s6 = sadd.s32 1, %s957_s11  ;;  %s309_s16 = sadd.s32 1, %s961_s16   ;;  %s961_s16 = sphi %s959_s16, %s309_s16   ;;  %s957_s11 = sphi %s955_s11, %s956_s11   ;;  %s953_s9 = sphi %s951_s9, %s324_s9   ;;  %s949_s8 = sphi %s947_s8, %s325_s8  }
  0x32   : >> { %316 = vst [vmem:[%s949_s8] sm:$0xff] %v315_v4  ;;  %p320_p12 = scmp.ge.s32.totalorder %s319_s6, %s1074_s28  ;;  %p308_p13 = scmp.ge.s32.totalorder %s309_s16, %s1074_s28 }
  0x33   : >> { %318 = vst [vmem:[%s949_s8 + $0x10] sm:$0xff] %v317_v5 }
  0x34   : >> { %s1177_s6 = smov (%p320_p12, %s319_s6), 0  ;;  %311 = sbr.rel (!%p308_p13) target bundleno = 49 (0x31), region = 160 }
  0x35   : >> { %s687_s10 = sshll.u32 %s1177_s6, 3  ;;  %s956_s11 = smov %s1177_s6  }
  0x36   : >> { %s324_s9 = scalar_lea.vmem %s1078_s30, %s687_s10   ;;  %s325_s8 = scalar_lea.vmem %s305_s7, %s687_s10 [#allocation3]  }
  0x39 PF: > { %p689_p0 = scmp.ge.s32.totalorder %s929_s22, 1  ;;  %p330_p1 = scmp.lt.s32.totalorder %s929_s22, 3 }
  0x3b   : > { %p331_p2 = pnand %p689_p0, %p330_p1 }
  0x3c   : > { %s337_s12 = sand.u32 (!%p331_p2), 1, %s913_s18   ;;  %p691_p3 = scmp.ne.s32.totalorder (!%p331_p2), %s921_s20, 0 }
  0x3d   : > { %334 = sbr.rel (%p331_p2) target bundleno = 550 (0x226), region = 88  ;;  %s690_s13 = sshll.u32 (!%p331_p2), %s337_s12, 5 }
  0x3e   : > { %s1089_s14 = scalar_lea.vmem (!%p331_p2), [#allocation3], %s690_s13 }
  0x42   : > { %368 = sbr.rel (%p691_p3) target bundleno = 74 (0x4a), region = 96 }
  0x47   : > { %vm369_vm0 = vcmask 261120   ;;  %v963_v6 = vmov 0.0  }
  0x48   : > { %370 = vst.msk [vmem:[#allocation2] sm:$0xff] %vm369_vm0, %v963_v6 }
  0x49   : > { %371 = vst.msk [vmem:[#allocation2 + $0x8] sm:$0xff] %vm369_vm0, %v963_v6 }
  0x4a PF: > { %s705_s15 = sshll.u32 %s921_s20, 4 }
  0x4b   : > { %s706_s17 = sadd.s32 16, %s705_s15 }
  0x4c   : > { %p693_p4 = scmp.gt.s32.totalorder %s706_s17, 20 }
  0x4e   : > { %377 = sbr.rel (%p693_p4) target bundleno = 91 (0x5b), region = 100 }
  0x53   : > { %v378_v7 = vld [vmem:[%s1089_s14] sm:$0xff]  ;;  %v379_v8 = vld [vmem:[%s1089_s14 + $0x8] sm:$0xff]  ;;  %vm384_vm1 = vcmask 261120   ;;  %v382_v9 = vld [vmem:[#allocation2] sm:$0xff] }
  0x54   : > { %v385_v10 = vsel %vm384_vm1, %v378_v7, 0.0  ;;  %v386_v11 = vsel %vm384_vm1, %v379_v8, 0.0  ;;  %v380_v12 = vld [vmem:[%s1089_s14 + $0x10] sm:$0xff]  ;;  %v381_v13 = vld [vmem:[%s1089_s14 + $0x18] sm:$0xff] }
  0x55   : > { %v387_v14 = vadd.f32 %v386_v11, %v385_v10  ;;  %v383_v15 = vld [vmem:[#allocation2 + $0x8] sm:$0xff]  ;;  %v388_v16 = vsel %vm384_vm1, %v380_v12, 0.0  ;;  %v389_v17 = vsel %vm384_vm1, %v381_v13, 0.0 }
  0x56   : > { %v390_v18 = vadd.f32 %v389_v17, %v388_v16 }
  0x57   : > { %v391_v19 = vadd.f32 %v387_v14, %v382_v9 }
  0x58   : > { %v392_v20 = vadd.f32 %v390_v18, %v383_v15 }
  0x59   : > { %393 = vst.msk [vmem:[#allocation2] sm:$0xff] %vm384_vm1, %v391_v19 }
  0x5a   : > { %394 = vst.msk [vmem:[#allocation2 + $0x8] sm:$0xff] %vm384_vm1, %v392_v20 }
  0x5b PF: > { %p694_p5 = scmp.le.s32.totalorder %s706_s17, 20 }
  0x5c   : > { %s400_s18 = ssub.s32 (!%p694_p5), 20, %s705_s15 }
  0x5d   : > { %398 = sbr.rel (%p694_p5) target bundleno = 113 (0x71), region = 104 }
  0x62   : > { %v401_v21 = vlaneseq  ;;  %v404_v22 = vstv %s400_s18  ;;  %v407_v24 = vld [vmem:[%s1089_s14] sm:$0xff]  ;;  %v409_v25 = vld [vmem:[%s1089_s14 + $0x10] sm:$0xff]  ;;  %vm421_vm2 = vcmask 261120   ;;  %v408_v27 = vld [vmem:[%s1089_s14 + $0x8] sm:$0xff] }
  0x63   : > { %v410_v28 = vld [vmem:[%s1089_s14 + $0x18] sm:$0xff]  ;;  %v419_v35 = vld [vmem:[#allocation2] sm:$0xff] }
  0x64   : > { %v402_v23 = vshrl.u32 %v401_v21, 7  ;;  %v420_v37 = vld [vmem:[#allocation2 + $0x8] sm:$0xff] }
  0x66   : > { %v403_v26 = vadd.s32 8, %v402_v23  ;;  %vm405_vm3 = vcmp.lt.s32.totalorder %v402_v23, %v404_v22 }
  0x67   : > { %v415_v29 = vsel %vm405_vm3, %v407_v24, 0.0  ;;  %v417_v30 = vsel %vm405_vm3, %v409_v25, 0.0 }
  0x68   : > { %vm406_vm4 = vcmp.lt.s32.totalorder %v403_v26, %v404_v22  ;;  %v422_v31 = vsel %vm421_vm2, %v415_v29, 0.0  ;;  %v425_v32 = vsel %vm421_vm2, %v417_v30, 0.0 }
  0x69   : > { %v416_v33 = vsel %vm406_vm4, %v408_v27, 0.0  ;;  %v418_v34 = vsel %vm406_vm4, %v410_v28, 0.0 }
  0x6a   : > { %v423_v36 = vsel %vm421_vm2, %v416_v33, 0.0  ;;  %v426_v38 = vsel %vm421_vm2, %v418_v34, 0.0 }
  0x6b   : > { %v424_v39 = vadd.f32 %v423_v36, %v422_v31  ;;  %v427_v40 = vadd.f32 %v426_v38, %v425_v32 }
  0x6d   : > { %v428_v41 = vadd.f32 %v424_v39, %v419_v35  ;;  %v429_v42 = vadd.f32 %v427_v40, %v420_v37 }
  0x6f   : > { %430 = vst.msk [vmem:[#allocation2] sm:$0xff] %vm421_vm2, %v428_v41 }
  0x70   : > { %431 = vst.msk [vmem:[#allocation2 + $0x8] sm:$0xff] %vm421_vm2, %v429_v42 }
  0x71 PF: > { %p696_p6 = scmp.ne.s32.totalorder %s921_s20, 1 }
  0x73   : > { %435 = sbr.rel (%p696_p6) target bundleno = 544 (0x220), region = 108 }
  0x78   : > { %v436_v43 = vld [vmem:[#allocation2] sm:$0xff]  ;;  %v437_v44 = vld [vmem:[#allocation2 + $0x8] sm:$0xff]  ;;  %vm438_vm5 = vcmask 261120   ;;  %vm457_vm6 = vcmask 1041409   ;;  %vm460_vm7 = vcmask 254976   ;;  %v964_v63 = vmov 32.0  }
  0x79   : > { %v439_v45 = vsel %vm438_vm5, %v436_v43, 0.0  ;;  %v446_v46 = vsel %vm438_vm5, %v437_v44, 0.0  ;;  %823 = vrcp.f32 %v964_v63  ;;  %v521_v16 = vld [vmem:[%s1160_s3 + $0x18] sm:$0xff]  ;;  %v520_v17 = vld [vmem:[%s1160_s3 + $0x10] sm:$0xff]  ;;  %v519_v18 = vld [vmem:[%s1160_s3 + $0x8] sm:$0xff] }
  0x7a   : > { %v440_v47 = vrot.slane %v439_v45, 4  ;;  %v447_v48 = vrot.slane %v446_v46, 4  ;;  %544 = vmatpush.msra.mxu0 %v521_v16  ;;  %v518_v19 = vld [vmem:[%s1160_s3] sm:$0xff] }
  0x7b   : > { %v820_v32 = vld [vmem:[%s1158_s1] ss:$0 sm:$0xff] }
  0x7c   : > { %v441_v49 = vadd.f32 %v440_v47, %v439_v45  ;;  %v448_v50 = vadd.f32 %v447_v48, %v446_v46  ;;  %545 = vmatpush.msra.mxu0 %v520_v17  ;;  %v821_v36 = vld [vmem:[%s1159_s2] ss:$0 sm:$0xff] }
  0x7d   : > { %v822_v41 = vld [vmem:[%s1161_s4] ss:$0 sm:$0xff] }
  0x7e   : > { %v442_v51 = vrot.slane %v441_v49, 2  ;;  %v449_v52 = vrot.slane %v448_v50, 2  ;;  %546 = vmatpush.msra.mxu0 %v519_v18 }
  0x7f   : > { %v824_v0 = vpop.eup %823 }
  0x80   : > { %v443_v53 = vadd.f32 %v442_v51, %v441_v49  ;;  %v450_v54 = vadd.f32 %v449_v52, %v448_v50  ;;  %v465_v1 = vmul.f32 32.0, %v824_v0  ;;  %vm469_vm8 = vweird.f32 %v824_v0  ;;  %547 = vmatpush.msra.mxu0 %v518_v19 }
  0x82   : > { %v444_v55 = vrot.slane %v443_v53, 1  ;;  %v451_v56 = vrot.slane %v450_v54, 1  ;;  %v466_v2 = vsub.f32 1.0, %v465_v1 }
  0x84   : > { %v445_v57 = vadd.f32 %v444_v55, %v443_v53  ;;  %v452_v58 = vadd.f32 %v451_v56, %v450_v54  ;;  %v467_v3 = vmul.f32 %v824_v0, %v466_v2 }
  0x86   : > { %v453_v59 = vmul.f32 0.05, %v445_v57  ;;  %v454_v60 = vmul.f32 0.05, %v452_v58  ;;  %v468_v4 = vadd.f32 %v824_v0, %v467_v3 }
  0x88   : > { %v458_v61 = vsel %vm457_vm6, %v454_v60, %v453_v59  ;;  %v470_v5 = vsel %vm469_vm8, %v824_v0, %v468_v4 }
  0x89   : > { %v461_v62 = vsel %vm460_vm7, %v458_v61, 0.0 }
  0x8a   : > { %462 = vadd.xlane.f32.xlu0 %v461_v62 }
  0xfd   : > { %v463_v6 = vpop.xlane.xlu0 %462 }
  0xfe   : > { %v471_v7 = vmul.f32 %v470_v5, %v463_v6 }
 0x100   : > { %v473_v8 = vrot.slane %v471_v7, 1  ;;  %v476_v9 = vsub.f32 %v453_v59, %v471_v7 }
 0x102   : > { %v477_v10 = vsub.f32 %v454_v60, %v473_v8  ;;  %v478_v12 = vmul.f32 %v476_v9, %v476_v9 }
 0x104   : > { %v479_v11 = vmul.f32 %v477_v10, %v477_v10 }
 0x106   : > { %v482_v13 = vrot.slane %v479_v11, 7 }
 0x108   : > { %v483_v14 = vsel %vm457_vm6, %v482_v13, %v478_v12 }
 0x109   : > { %v485_v15 = vsel %vm460_vm7, %v483_v14, 0.0 }
 0x10a   : > { %486 = vadd.xlane.f32.xlu0 %v485_v15 }
 0x17d   : > { %v487_v20 = vpop.xlane.xlu0 %486 }
 0x17e   : > { %v488_v21 = vmul.f32 %v487_v20, %v470_v5 }
 0x180   : > { %v489_v22 = vadd.f32 1e-05, %v488_v21 }
 0x182   : > { %825 = vrsqrt.f32 %v489_v22  ;;  %vm496_vm10 = vweird.f32 %v489_v22 }
 0x188   : > { %v826_v23 = vpop.eup %825 }
 0x189   : > { %v491_v24 = vmul.f32 %v826_v23, %v489_v22  ;;  %vm497_vm9 = vweird.f32 %v826_v23 }
 0x18a   : > { %vm498_vm11 = vmor %vm496_vm10, %vm497_vm9 }
 0x18b   : > { %v492_v25 = vmul.f32 %v826_v23, %v491_v24 }
 0x18d   : > { %v493_v26 = vmul.f32 0.5, %v492_v25 }
 0x18f   : > { %v494_v27 = vsub.f32 1.5, %v493_v26 }
 0x191   : > { %v495_v28 = vmul.f32 %v826_v23, %v494_v27 }
 0x193   : > { %v499_v29 = vsel %vm498_vm11, %v826_v23, %v495_v28 }
 0x194   : > { %v501_v30 = vrot.slane %v499_v29, 1  ;;  %v504_v31 = vmul.f32 %v499_v29, %v476_v9 }
 0x196   : > { %v505_v33 = vmul.f32 %v501_v30, %v477_v10  ;;  %v510_v34 = vmul.f32 %v820_v32, %v504_v31 }
 0x198   : > { %v511_v35 = vmul.f32 %v820_v32, %v505_v33  ;;  %v516_v38 = vadd.f32 %v821_v36, %v510_v34 }
 0x19a   : > { %v517_v37 = vadd.f32 %v821_v36, %v511_v35 }
 0x19c   : > { %v528_v39 = vrot.slane %v517_v37, 7 }
 0x19e   : > { %v529_v40 = vsel %vm457_vm6, %v528_v39, %v516_v38 }
 0x19f   : > { %697 = vmatmul.msk.f32.vlgmr.msra.gmra.mxu0 %vm438_vm5, %v529_v40 }
 0x21c   : > { %v549_v42 = vpop.f32.mrf.mxu0 }
 0x21d   : > { %v550_v43 = vadd.f32 %v822_v41, %v549_v42 }
 0x21f   : > { %552 = vst [vmem:[#allocation4] sm:$0x3] %v550_v43 }
 0x220 PF: > { %p711_p7 = scmp.eq.s32.totalorder %s671_s23, 1  ;;  %s563_s15 = sshll.u32 %s1162_s5, 4  ;;  %s564_s15 = int_to_ptr.hbm [resolvable:$true] %s563_s15 }
 0x221   : > { %s965_s17 = smov [#allocation4]  }
 0x222   : > { %s561_s18 = sshll.u32 %s965_s17, 4  ;;  %s562_s18 = int_to_ptr.vmem [resolvable:$true] %s561_s18 }
 0x223   : > { %708 = dma.vmem_to_hbm [thread:$0]  (%p711_p7), %s562_s18, 32, %s564_s15, [#allocation5]  }
 0x224   : > { %908 = dma.done.wait (%p711_p7), [#allocation5], 32  }
 0x225   : > { %910 = vsyncadd (%p711_p7), [#allocation5], 4294967264 }
 0x226 PF: > { %s16_s22 = sadd.s32 1, %s929_s22   ;;  %s1166_s18 = smov %s917_s19 }
 0x227   : > { %p13_p8 = scmp.ge.s32.totalorder %s16_s22, 4   ;;  %s1167_s19 = smov %s1032_s27 }
 0x228   : > { %s1168_s20 = smov %s925_s21  ;;  %s1169_s21 = smov %s1171_s24 }
 0x229   :  { %15 = sbr.rel (!%p13_p8) target bundleno = 3 (0x3), region = 171 }
 0x22e   :  { %577 = vsyncpa [#allocation5], 1 }
 0x22f   :  { %579 = vsyncpa [#allocation5 + $0x1], 1 }

</bundles_post_ra>
